<compile_context>
chip_gen: v7x
topology: tpu7x:2x2x1
jax: 0.10.0
libtpu: 0.0.40
codegen_flags: <defaults>
</compile_context>

<pallas_src>
import functools

import jax
import jax.numpy as jnp
import numpy as np
from jax.experimental import pallas as pl
from jax.experimental.pallas import tpu as pltpu


def _round_up(v, m):
    return (v + m - 1) // m * m


def samepad_conv_kernel(x_ref, w_ref, b_ref, out_ref):
    # x_ref:   (TL, KC_p)      im2col'd rows, tight (tap, cin) packing
    # w_ref:   (KC_p, Cout_p)  fused per-tap weights
    # b_ref:   (1, Cout_p)
    # out_ref: (TL, Cout_p)
    acc = jnp.dot(x_ref[...], w_ref[...], preferred_element_type=jnp.float32)
    out_ref[...] = (acc + b_ref[...]).astype(out_ref.dtype)


@functools.partial(jax.jit,
                   static_argnames=("dilation", "groups", "tile_t",
                                    "compute_dtype"))
def same_pad_conv_pallas(x, weight, bias, *, dilation=1, groups=1,
                         tile_t=1024, compute_dtype=jnp.float32):
    """SamePadConv forward.

    x:      (B, Cin, T)    float32  (PyTorch NCL layout)
    weight: (Cout, Cin, K) float32  (PyTorch Conv1d layout)
    bias:   (Cout,)        float32
    returns (B, Cout, T)   float32
    """
    if groups != 1:
        # TODO(synk): grouped Conv1d (groups > 1) not implemented; ts2vec uses groups=1.
        raise NotImplementedError("groups > 1 not supported")

    B, Cin, T = x.shape
    Cout, _, K = weight.shape
    rf = (K - 1) * dilation + 1
    pad_l = rf // 2
    pad_r = rf - 1 - pad_l          # only the first T conv outputs are kept

    # --- channels-last + im2col with tight (tap, cin) packing --------------
    x_tc = jnp.transpose(x, (0, 2, 1)).astype(jnp.float32)        # (B, T, Cin)
    x_tp = jnp.pad(x_tc, ((0, 0), (pad_l, pad_r), (0, 0)))        # (B, T+rf-1, Cin)
    cols = [x_tp[:, k * dilation:k * dilation + T, :] for k in range(K)]
    x_cols = jnp.concatenate(cols, axis=-1)                       # (B, T, K*Cin)

    KC = K * Cin
    KC_p = _round_up(KC, 128)           # lane-dense contraction depth
    Cout_p = _round_up(Cout, 128)       # lane-dense output width

    # Rows are independent after im2col -> flatten batch & time, tile rows.
    M = B * T
    TL = _round_up(min(tile_t, _round_up(M, 8)), 8)
    n_m = -(-M // TL)
    M_p = n_m * TL

    x_flat = jnp.pad(x_cols.reshape(M, KC),
                     ((0, M_p - M), (0, KC_p - KC))).astype(compute_dtype)

    # weights (Cout, Cin, K) -> (K*Cin, Cout); same (k, cin) packing as x_cols
    w = jnp.transpose(weight, (2, 1, 0)).reshape(KC, Cout)
    w = jnp.pad(w, ((0, KC_p - KC), (0, Cout_p - Cout))).astype(compute_dtype)
    b = jnp.pad(bias.astype(jnp.float32),
                ((0, Cout_p - Cout),)).reshape(1, Cout_p)

    # --- honest VMEM budget & cost estimate ---------------------------------
    in_sz = jnp.dtype(compute_dtype).itemsize
    vmem_bytes = (2 * TL * KC_p * in_sz        # x tile, double buffered
                  + 2 * KC_p * Cout_p * in_sz  # weights (grid-invariant)
                  + 2 * Cout_p * 4             # bias
                  + 2 * TL * Cout_p * 4)       # output, double buffered
    vmem_limit = int(min(vmem_bytes + (8 << 20), 48 << 20))

    flops = 2 * M_p * KC_p * Cout_p
    bytes_accessed = (in_sz * (M_p * KC_p + KC_p * Cout_p)
                      + 4 * (Cout_p + M_p * Cout_p))

    out = pl.pallas_call(
        samepad_conv_kernel,
        out_shape=jax.ShapeDtypeStruct((M_p, Cout_p), jnp.float32),
        grid=(n_m,),
        in_specs=[
            pl.BlockSpec((TL, KC_p), lambda i: (i, 0)),       # im2col rows
            pl.BlockSpec((KC_p, Cout_p), lambda i: (0, 0)),   # fused weights
            pl.BlockSpec((1, Cout_p), lambda i: (0, 0)),      # bias
        ],
        out_specs=pl.BlockSpec((TL, Cout_p), lambda i: (i, 0)),
        compiler_params=pltpu.CompilerParams(
            dimension_semantics=("parallel",),
            vmem_limit_bytes=vmem_limit),
        cost_estimate=pl.CostEstimate(flops=flops, transcendentals=0,
                                      bytes_accessed=bytes_accessed),
    )(x_flat, w, b)

    out = out[:M, :Cout].reshape(B, T, Cout)      # drop row / lane padding
    return jnp.transpose(out, (0, 2, 1))          # back to (B, Cout, T)


# ---------------- pure-JAX reference (for verification) ----------------
def same_pad_conv_ref(x, weight, bias, *, dilation=1):
    K = weight.shape[-1]
    rf = (K - 1) * dilation + 1
    pad = rf // 2
    out = jax.lax.conv_general_dilated(
        x, weight, window_strides=(1,), padding=[(pad, pad)],
        rhs_dilation=(dilation,), dimension_numbers=("NCH", "OIH", "NCH"))
    out = out + bias[None, :, None]
    if rf % 2 == 0:
        out = out[:, :, :-1]
    return out


if __name__ == "__main__":
    # SamePadConv(in_channels=4, out_channels=8, kernel_size=K, dilation=d)
    B, Cin, Cout, T = 2, 4, 8, 16
    key = jax.random.PRNGKey(0)

    # (kernel_size, dilation): odd receptive field (rf=5) and even rf=2
    # (exercises the trailing-element-removal path).
    configs = [(3, 2), (2, 1)]

    for (K, dilation) in configs:
        key, kx, kw, kb = jax.random.split(key, 4)
        x = jax.random.normal(kx, (B, Cin, T), jnp.float32)
        w = 0.2 * jax.random.normal(kw, (Cout, Cin, K), jnp.float32)
        b = 0.1 * jax.random.normal(kb, (Cout,), jnp.float32)

        out = jax.block_until_ready(
            same_pad_conv_pallas(x, w, b, dilation=dilation))
        ref = same_pad_conv_ref(x, w, b, dilation=dilation)
        np.testing.assert_allclose(np.asarray(out), np.asarray(ref),
                                   rtol=1e-3, atol=1e-3)

    print("KERNEL_OK")
</pallas_src>

<mosaic_0001>
module attributes {stable_mosaic.version = 11 : i64} {
  func.func @samepad_conv_kernel(%arg0: i32, %arg1: memref<32x128xf32, #tpu.memory_space<vmem>>, %arg2: memref<128x128xf32, #tpu.memory_space<vmem>>, %arg3: memref<1x128xf32, #tpu.memory_space<vmem>>, %arg4: memref<32x128xf32, #tpu.memory_space<vmem>>) attributes {dimension_semantics = [#tpu.dimension_semantics<parallel>], iteration_bounds = array<i64: 1>, scalar_prefetch = 0 : i64, scratch_operands = 0 : i64, tpu.core_type = #tpu.core_type<tc>, window_params = [{transform_indices = @transform_0, window_bounds = array<i64: 32, 128>}, {pipeline_mode = #tpu.pipeline_mode<synchronous>, transform_indices = @transform_1, window_bounds = array<i64: 128, 128>}, {pipeline_mode = #tpu.pipeline_mode<synchronous>, transform_indices = @transform_2, window_bounds = array<i64: 1, 128>}, {transform_indices = @transform_3, window_bounds = array<i64: 32, 128>}]} {
    %c0 = arith.constant 0 : index
    %c0_0 = arith.constant 0 : index
    %0 = vector.load %arg1[%c0, %c0_0] : memref<32x128xf32, #tpu.memory_space<vmem>>, vector<32x128xf32>
    %c0_1 = arith.constant 0 : index
    %c0_2 = arith.constant 0 : index
    %1 = vector.load %arg2[%c0_1, %c0_2] : memref<128x128xf32, #tpu.memory_space<vmem>>, vector<128x128xf32>
    %cst = arith.constant dense<0.000000e+00> : vector<32x128xf32>
    %2 = tpu.matmul %0, %1, %cst {dimension_numbers = #tpu.dot_dimension_numbers<[1], [0], [0], [1], [0, 0, 1, 1], [], []>} : vector<32x128xf32>, vector<128x128xf32>, vector<32x128xf32> -> vector<32x128xf32>
    %c0_3 = arith.constant 0 : index
    %c0_4 = arith.constant 0 : index
    %3 = vector.load %arg3[%c0_3, %c0_4] : memref<1x128xf32, #tpu.memory_space<vmem>>, vector<1x128xf32>
    %4 = vector.broadcast %3 : vector<1x128xf32> to vector<32x128xf32>
    %5 = arith.addf %2, %4 : vector<32x128xf32>
    %c0_5 = arith.constant 0 : index
    %c0_6 = arith.constant 0 : index
    %6 = vector.load %arg4[%c0_5, %c0_6] : memref<32x128xf32, #tpu.memory_space<vmem>>, vector<32x128xf32>
    tpu.vector_store %arg4[%c0_5, %c0_6], %5 {strides = array<i32>} : memref<32x128xf32, #tpu.memory_space<vmem>>, vector<32x128xf32>,
    return
  }
  func.func @transform_0(%arg0: i32) -> (i32, i32) {
    %c0_i32 = arith.constant 0 : i32
    %c0_i32_0 = arith.constant 0 : i32
    return %arg0, %c0_i32 : i32, i32
  }
  func.func @transform_1(%arg0: i32) -> (i32, i32) {
    %c0_i32 = arith.constant 0 : i32
    %c0_i32_0 = arith.constant 0 : i32
    %c0_i32_1 = arith.constant 0 : i32
    return %c0_i32, %c0_i32_0 : i32, i32
  }
  func.func @transform_2(%arg0: i32) -> (i32, i32) {
    %c0_i32 = arith.constant 0 : i32
    %c0_i32_0 = arith.constant 0 : i32
    %c0_i32_1 = arith.constant 0 : i32
    return %c0_i32, %c0_i32_0 : i32, i32
  }
  func.func @transform_3(%arg0: i32) -> (i32, i32) {
    %c0_i32 = arith.constant 0 : i32
    %c0_i32_0 = arith.constant 0 : i32
    return %arg0, %c0_i32 : i32, i32
  }
}

</mosaic_0001>

<bundles_post_ra>
// kernel: same_pad_conv_pallas.1
= control target key start
LH: loop header
LB: loop body
LE: loop exit
PB: predicated region body
PF: predicated region fallthrough
CT: control target
= control target key end

     0   :  { %s336_s1 = inlined_call_operand.vmem [shape: f32[128,128], index: 1, kind: input, shape index: {}]   ;;  %s337_s0 = inlined_call_operand.vmem [shape: f32[32,128], index: 0, kind: input, shape index: {}]   ;;  %s338_s2 = inlined_call_operand.vmem [shape: f32[1,128], index: 2, kind: input, shape index: {}]   ;;  %s339_s3 = inlined_call_operand.vmem [shape: f32[32,128], index: 3, kind: output, shape index: {}]  }
   0x1   :  { %v18_v0 = vld [vmem:[%s336_s1] sm:$0xff]  ;;  %v19_v1 = vld [vmem:[%s336_s1 + $0x8] sm:$0xff]  ;;  %v20_v2 = vld [vmem:[%s336_s1 + $0x10] sm:$0xff] }
   0x2   :  { %v193_v3 = vpack.c.bf16 %v19_v1, %v18_v0  ;;  %v21_v4 = vld [vmem:[%s336_s1 + $0x18] sm:$0xff]  ;;  %v22_v6 = vld [vmem:[%s336_s1 + $0x20] sm:$0xff]  ;;  %v23_v7 = vld [vmem:[%s336_s1 + $0x28] sm:$0xff] }
   0x3   :  { %v197_v5 = vpack.c.bf16 %v21_v4, %v20_v2  ;;  %v201_v8 = vpack.c.bf16 %v23_v7, %v22_v6  ;;  %v14_v9 = vld [vmem:[%s337_s0] sm:$0xff]  ;;  %v16_v10 = vld [vmem:[%s337_s0 + $0x10] sm:$0xff]  ;;  %v25_v12 = vld [vmem:[%s336_s1 + $0x38] sm:$0xff] }
   0x4   :  { %194 = vmatprep.subr.bf16.mxu0 %v193_v3  ;;  %225 = vmatprep.subr.bf16.mxu1 %v193_v3  ;;  %v24_v11 = vld [vmem:[%s336_s1 + $0x30] sm:$0xff]  ;;  %v26_v14 = vld [vmem:[%s336_s1 + $0x40] sm:$0xff]  ;;  %v27_v15 = vld [vmem:[%s336_s1 + $0x48] sm:$0xff] }
   0x5   :  { %196 = vmatpush3.bf16.msra.mxu0 %v193_v3  ;;  %233 = vmatpush3.bf16.msra.mxu1 %v193_v3  ;;  %v205_v13 = vpack.c.bf16 %v25_v12, %v24_v11  ;;  %v209_v16 = vpack.c.bf16 %v27_v15, %v26_v14  ;;  %v28_v17 = vld [vmem:[%s336_s1 + $0x50] sm:$0xff]  ;;  %v29_v18 = vld [vmem:[%s336_s1 + $0x58] sm:$0xff]  ;;  %v30_v20 = vld [vmem:[%s336_s1 + $0x60] sm:$0xff] }
   0x6   :  { %198 = vmatprep.subr.bf16.mxu0 %v197_v5  ;;  %226 = vmatprep.subr.bf16.mxu1 %v197_v5  ;;  %v213_v19 = vpack.c.bf16 %v29_v18, %v28_v17  ;;  %v31_v21 = vld [vmem:[%s336_s1 + $0x68] sm:$0xff]  ;;  %v32_v23 = vld [vmem:[%s336_s1 + $0x70] sm:$0xff]  ;;  %v33_v24 = vld [vmem:[%s336_s1 + $0x78] sm:$0xff] }
   0x7   :  { %187 = vmatprep.mubr.f32.mxu0 %v14_v9  ;;  %190 = vmatprep.mubr.f32.mxu1 %v16_v10  ;;  %v217_v22 = vpack.c.bf16 %v31_v21, %v30_v20  ;;  %v221_v25 = vpack.c.bf16 %v33_v24, %v32_v23  ;;  %v15_v26 = vld [vmem:[%s337_s0 + $0x8] sm:$0xff]  ;;  %v17_v27 = vld [vmem:[%s337_s0 + $0x18] sm:$0xff]  ;;  %v134_v28 = vld [vmem:[%s338_s2] ss:$0 sm:$0xff] }
   0x9   :  { %200 = vmatpush3.bf16.msra.mxu0 %v197_v5  ;;  %234 = vmatpush3.bf16.msra.mxu1 %v197_v5 }
   0xa   :  { %202 = vmatprep.subr.bf16.mxu0 %v201_v8  ;;  %227 = vmatprep.subr.bf16.mxu1 %v201_v8 }
   0xd   :  { %204 = vmatpush3.bf16.msra.mxu0 %v201_v8  ;;  %235 = vmatpush3.bf16.msra.mxu1 %v201_v8 }
   0xe   :  { %206 = vmatprep.subr.bf16.mxu0 %v205_v13  ;;  %228 = vmatprep.subr.bf16.mxu1 %v205_v13 }
  0x11   :  { %208 = vmatpush3.bf16.msra.mxu0 %v205_v13  ;;  %236 = vmatpush3.bf16.msra.mxu1 %v205_v13 }
  0x12   :  { %210 = vmatprep.subr.bf16.mxu0 %v209_v16  ;;  %229 = vmatprep.subr.bf16.mxu1 %v209_v16 }
  0x15   :  { %212 = vmatpush3.bf16.msra.mxu0 %v209_v16  ;;  %237 = vmatpush3.bf16.msra.mxu1 %v209_v16 }
  0x16   :  { %214 = vmatprep.subr.bf16.mxu0 %v213_v19  ;;  %230 = vmatprep.subr.bf16.mxu1 %v213_v19 }
  0x19   :  { %216 = vmatpush3.bf16.msra.mxu0 %v213_v19  ;;  %238 = vmatpush3.bf16.msra.mxu1 %v213_v19 }
  0x1a   :  { %218 = vmatprep.subr.bf16.mxu0 %v217_v22  ;;  %231 = vmatprep.subr.bf16.mxu1 %v217_v22 }
  0x1d   :  { %220 = vmatpush3.bf16.msra.mxu0 %v217_v22  ;;  %239 = vmatpush3.bf16.msra.mxu1 %v217_v22 }
  0x1e   :  { %222 = vmatprep.subr.bf16.mxu0 %v221_v25  ;;  %232 = vmatprep.subr.bf16.mxu1 %v221_v25 }
  0x21   :  { %224 = vmatpush3.bf16.msra.mxu0 %v221_v25  ;;  %240 = vmatpush3.bf16.msra.mxu1 %v221_v25 }
  0x24   :  { %188 = vmatmul.mubr.f32.vlgmr.msra.gmra.mrb[0].mxu0 %v15_v26  ;;  %191 = vmatmul.mubr.f32.vlgmr.msra.gmra.mrb[0].mxu1 %v17_v27 }
  0xf7   :  { %v189_v29 = vpop.f32.mrb[0].mxu0  ;;  %v192_v30 = vpop.f32.mrb[0].mxu1 }
  0xf8   :  { %v113_v31 = vadd.f32 %v189_v29, %v134_v28  ;;  %v123_v32 = vadd.f32 %v192_v30, %v134_v28  ;;  %v107_v33 = vpop.f32.mrb[1].mxu0  ;;  %v117_v34 = vpop.f32.mrb[1].mxu1 }
  0xf9   :  { %v108_v35 = vadd.f32 %v134_v28, %v107_v33  ;;  %v118_v36 = vadd.f32 %v134_v28, %v117_v34 }
  0xfa   :  { %127 = vst [vmem:[%s339_s3 + $0x8] sm:$0xff] %v113_v31  ;;  %129 = vst [vmem:[%s339_s3 + $0x18] sm:$0xff] %v123_v32 }
  0xfb   :  { %126 = vst [vmem:[%s339_s3] sm:$0xff] %v108_v35  ;;  %128 = vst [vmem:[%s339_s3 + $0x10] sm:$0xff] %v118_v36 }

</bundles_post_ra>
